<compile_context>
chip_gen: v7x
topology: tpu7x:2x2x1
jax: 0.10.0
libtpu: 0.0.40
codegen_flags: <defaults>
</compile_context>

<pallas_src>
import functools

import jax
import jax.numpy as jnp
from jax.experimental import pallas as pl
from jax.experimental.pallas import tpu as pltpu


_TARGET_TILE_BYTES = 4 * 1024 * 1024   # 2–8 MiB output tiles hit ~85%+ of HBM roofline
_VMEM_LIMIT_BYTES = 32 * 1024 * 1024   # > v5e's 16 MiB default, <= v7x physical headroom


def _round_up(x, m):
    return ((x + m - 1) // m) * m


def _sublane_for(dtype):
    itemsize = jnp.dtype(dtype).itemsize
    if itemsize >= 4:
        return 8
    if itemsize == 2:
        return 16
    return 32


# ---------------------------------------------------------------------------
# Path A: channels_num >= 128 (or not dividing 128) — row-tiled kernel.
# ---------------------------------------------------------------------------
def _pos_emb_row_kernel(x_ref, f_ref, o_ref, *, half, split_store):
    # x_ref: (TN, 1) positions, f_ref: (1, half) freqs, o_ref: (TN, 2*half).
    x = x_ref[...].astype(jnp.float32)          # (TN, 1)
    f = f_ref[...].astype(jnp.float32)          # (1, half)
    phase = x * f                               # f32 outer product (TN, half)
    if split_store:
        # half % 128 == 0 -> both half-stores are dense, lane-aligned vst's;
        # no full-width f32 concat intermediate is materialized.
        o_ref[:, :half] = jnp.cos(phase).astype(o_ref.dtype)
        o_ref[:, half:] = jnp.sin(phase).astype(o_ref.dtype)
    else:
        emb = jnp.concatenate([jnp.cos(phase), jnp.sin(phase)], axis=1)
        o_ref[...] = emb.astype(o_ref.dtype)    # single dense store


def _pos_emb_rows(x, freqs_f32, channels_num):
    n = x.shape[0]
    half = channels_num // 2
    out_dtype = x.dtype
    sub = _sublane_for(out_dtype)
    itemsize = jnp.dtype(out_dtype).itemsize

    # Size the row tile by target output-tile bytes, rounded to the dtype's
    # sublane packing, clamped to the (sublane-rounded) problem size.
    bytes_per_row = channels_num * itemsize
    tn = max(sub, (_TARGET_TILE_BYTES // max(1, bytes_per_row)) // sub * sub)
    tn = min(tn, _round_up(n, sub))
    grid = (pl.cdiv(n, tn),)

    kernel = functools.partial(
        _pos_emb_row_kernel, half=half, split_store=(half % 128 == 0))

    x2 = x.reshape(n, 1)
    f2 = freqs_f32.reshape(1, half)

    return pl.pallas_call(
        kernel,
        out_shape=jax.ShapeDtypeStruct((n, channels_num), out_dtype),
        grid=grid,
        in_specs=[
            pl.BlockSpec((tn, 1), lambda i: (i, 0)),     # stream positions
            pl.BlockSpec((1, half), lambda i: (0, 0)),   # freqs resident
        ],
        out_specs=pl.BlockSpec((tn, channels_num), lambda i: (i, 0)),
        compiler_params=pltpu.CompilerParams(
            dimension_semantics=("parallel",),
            vmem_limit_bytes=_VMEM_LIMIT_BYTES,
        ),
        cost_estimate=pl.CostEstimate(
            flops=n * channels_num,
            transcendentals=n * channels_num,
            bytes_accessed=n * channels_num * itemsize + n * x.dtype.itemsize,
        ),
    )(x2, f2)


# ---------------------------------------------------------------------------
# Path B: channels_num < 128 and 128 % channels_num == 0 — lane-dense kernel.
# The contiguous (N, C) output is viewed as (N*C/128, 128); each lane-row
# holds r = 128 // C full embeddings.  Phase is an exact sum of masked outer
# products, output is cos/sin selected by a static lane mask.
# ---------------------------------------------------------------------------
def _pos_emb_lane_kernel(xg_ref, w_ref, m_ref, o_ref, *, r):
    xg = xg_ref[...].astype(jnp.float32)        # (TG, r) positions
    w = w_ref[...]                              # (r, 128) f32 masked freqs
    phase = xg[:, 0:1] * w[0:1, :]              # (TG, 128)
    for j in range(1, r):                       # exact: one nonzero term/lane
        phase = phase + xg[:, j:j + 1] * w[j:j + 1, :]
    cosv = jnp.cos(phase)
    sinv = jnp.sin(phase)
    is_cos = m_ref[...] > 0.5                   # (1, 128) static lane pattern
    o_ref[...] = jnp.where(is_cos, cosv, sinv).astype(o_ref.dtype)


def _pos_emb_lane_dense(x, freqs_f32, channels_num):
    n = x.shape[0]
    half = channels_num // 2
    out_dtype = x.dtype
    sub = _sublane_for(out_dtype)
    itemsize = jnp.dtype(out_dtype).itemsize
    r = 128 // channels_num                     # positions per 128-lane row

    # Pad N so the flat output reshapes into whole, sublane-aligned 128-wide
    # rows; the (tiny) padded tail is sliced off after the call.
    n_pad = _round_up(max(n, 1), r * sub)
    x_pad = x if n_pad == n else jnp.pad(x, (0, n_pad - n))
    g = n_pad // r
    xg = x_pad.reshape(g, r)

    # Resident lane patterns.
    k = jnp.arange(128)
    chan = k % channels_num
    f_lane = freqs_f32[chan % half]             # (128,)
    w = jnp.where((k // channels_num)[None, :] == jnp.arange(r)[:, None],
                  f_lane[None, :], 0.0).astype(jnp.float32)          # (r, 128)
    cos_mask = (chan < half).astype(jnp.float32).reshape(1, 128)     # (1, 128)

    tg = max(sub, (_TARGET_TILE_BYTES // (128 * itemsize)) // sub * sub)
    tg = min(tg, g)
    grid = (pl.cdiv(g, tg),)

    out_flat = pl.pallas_call(
        functools.partial(_pos_emb_lane_kernel, r=r),
        out_shape=jax.ShapeDtypeStruct((g, 128), out_dtype),
        grid=grid,
        in_specs=[
            pl.BlockSpec((tg, r), lambda i: (i, 0)),     # grouped positions
            pl.BlockSpec((r, 128), lambda i: (0, 0)),    # masked freqs resident
            pl.BlockSpec((1, 128), lambda i: (0, 0)),    # cos/sin lane mask
        ],
        out_specs=pl.BlockSpec((tg, 128), lambda i: (i, 0)),
        compiler_params=pltpu.CompilerParams(
            dimension_semantics=("parallel",),
            vmem_limit_bytes=_VMEM_LIMIT_BYTES,
        ),
        cost_estimate=pl.CostEstimate(
            flops=(2 * r) * g * 128,
            transcendentals=2 * g * 128,
            bytes_accessed=g * 128 * itemsize + n_pad * x.dtype.itemsize,
        ),
    )(xg, w, cos_mask)

    out = out_flat.reshape(n_pad, channels_num)
    return out if n_pad == n else out[:n]


# ---------------------------------------------------------------------------
# Public wrapper — same semantics as the PyTorch module's forward.
# ---------------------------------------------------------------------------
def positional_embedding(x, channels_num, max_positions=10000, endpoint=False):
    """x: 1-D array of positions (N,). Returns (N, channels_num) = [cos | sin]."""
    assert x.ndim == 1, "PositionalEmbedding expects a 1-D vector of positions"
    assert channels_num % 2 == 0 and channels_num >= 2, "channels_num must be even"
    half = channels_num // 2

    # Frequency setup — exact torch parity (including the endpoint=True,
    # half==1 divide-by-zero -> nan behaviour, and the freqs.to(x.dtype)
    # quantization); the kernel then computes in f32 and casts at the store.
    freqs = jnp.arange(half, dtype=jnp.float32)
    freqs = freqs / (half - (1 if endpoint else 0))
    freqs = (1.0 / max_positions) ** freqs
    freqs = freqs.astype(x.dtype).astype(jnp.float32)

    if channels_num < 128 and 128 % channels_num == 0 and channels_num >= 8:
        return _pos_emb_lane_dense(x, freqs, channels_num)
    return _pos_emb_rows(x, freqs, channels_num)


if __name__ == "__main__":
    key = jax.random.PRNGKey(0)
    k1, k2 = jax.random.split(key)

    def ref_pos_emb(x, channels_num, max_positions=10000, endpoint=False):
        half = channels_num // 2
        freqs = jnp.arange(half, dtype=jnp.float32)
        freqs = freqs / (half - (1 if endpoint else 0))
        freqs = (1.0 / max_positions) ** freqs
        phase = x[:, None] * freqs[None, :].astype(x.dtype).astype(jnp.float32)
        return jnp.concatenate([jnp.cos(phase), jnp.sin(phase)], axis=1).astype(x.dtype)

    # Case 1: narrow channels (C = 32 < 128) -> lane-dense path.
    N1, C1 = 8, 32
    x1 = jax.random.uniform(k1, (N1,), dtype=jnp.float32) * 1000.0
    out1 = jax.block_until_ready(positional_embedding(x1, C1))
    ref1 = ref_pos_emb(x1, C1)
    assert out1.shape == (N1, C1)
    assert jnp.allclose(out1, ref1, atol=1e-5, rtol=1e-5)

    # Case 2: wide channels (C = 256, half % 128 == 0) -> row-tiled split-store path.
    N2, C2 = 16, 256
    x2 = jax.random.uniform(k2, (N2,), dtype=jnp.float32) * 1000.0
    out2 = jax.block_until_ready(positional_embedding(x2, C2))
    ref2 = ref_pos_emb(x2, C2)
    assert out2.shape == (N2, C2)
    assert jnp.allclose(out2, ref2, atol=1e-5, rtol=1e-5)

    print("KERNEL_OK")
</pallas_src>

<mosaic_0001>
module attributes {stable_mosaic.version = 11 : i64} {
  func.func @_pos_emb_lane_kernel(%arg0: i32, %arg1: memref<8x4xf32, #tpu.memory_space<vmem>>, %arg2: memref<4x128xf32, #tpu.memory_space<vmem>>, %arg3: memref<1x128xf32, #tpu.memory_space<vmem>>, %arg4: memref<8x128xf32, #tpu.memory_space<vmem>>) attributes {dimension_semantics = [#tpu.dimension_semantics<parallel>], iteration_bounds = array<i64: 1>, scalar_prefetch = 0 : i64, scratch_operands = 0 : i64, tpu.core_type = #tpu.core_type<tc>, window_params = [{transform_indices = @transform_0, window_bounds = array<i64: 8, 4>}, {pipeline_mode = #tpu.pipeline_mode<synchronous>, transform_indices = @transform_1, window_bounds = array<i64: 4, 128>}, {pipeline_mode = #tpu.pipeline_mode<synchronous>, transform_indices = @transform_2, window_bounds = array<i64: 1, 128>}, {transform_indices = @transform_3, window_bounds = array<i64: 8, 128>}]} {
    %c0 = arith.constant 0 : index
    %c0_0 = arith.constant 0 : index
    %0 = vector.load %arg1[%c0, %c0_0] : memref<8x4xf32, #tpu.memory_space<vmem>>, vector<8x4xf32>
    %c0_1 = arith.constant 0 : index
    %c0_2 = arith.constant 0 : index
    %1 = vector.load %arg2[%c0_1, %c0_2] : memref<4x128xf32, #tpu.memory_space<vmem>>, vector<4x128xf32>
    %2 = vector.extract_strided_slice %0 {offsets = [0, 0], sizes = [8, 1], strides = [1, 1]} : vector<8x4xf32> to vector<8x1xf32>
    %3 = vector.extract_strided_slice %1 {offsets = [0, 0], sizes = [1, 128], strides = [1, 1]} : vector<4x128xf32> to vector<1x128xf32>
    %4 = vector.broadcast %2 : vector<8x1xf32> to vector<8x128xf32>
    %5 = vector.broadcast %3 : vector<1x128xf32> to vector<8x128xf32>
    %6 = arith.mulf %4, %5 : vector<8x128xf32>
    %7 = vector.extract_strided_slice %0 {offsets = [0, 1], sizes = [8, 1], strides = [1, 1]} : vector<8x4xf32> to vector<8x1xf32>
    %8 = vector.extract_strided_slice %1 {offsets = [1, 0], sizes = [1, 128], strides = [1, 1]} : vector<4x128xf32> to vector<1x128xf32>
    %9 = vector.broadcast %7 : vector<8x1xf32> to vector<8x128xf32>
    %10 = vector.broadcast %8 : vector<1x128xf32> to vector<8x128xf32>
    %11 = arith.mulf %9, %10 : vector<8x128xf32>
    %12 = arith.addf %6, %11 : vector<8x128xf32>
    %13 = vector.extract_strided_slice %0 {offsets = [0, 2], sizes = [8, 1], strides = [1, 1]} : vector<8x4xf32> to vector<8x1xf32>
    %14 = vector.extract_strided_slice %1 {offsets = [2, 0], sizes = [1, 128], strides = [1, 1]} : vector<4x128xf32> to vector<1x128xf32>
    %15 = vector.broadcast %13 : vector<8x1xf32> to vector<8x128xf32>
    %16 = vector.broadcast %14 : vector<1x128xf32> to vector<8x128xf32>
    %17 = arith.mulf %15, %16 : vector<8x128xf32>
    %18 = arith.addf %12, %17 : vector<8x128xf32>
    %19 = vector.extract_strided_slice %0 {offsets = [0, 3], sizes = [8, 1], strides = [1, 1]} : vector<8x4xf32> to vector<8x1xf32>
    %20 = vector.extract_strided_slice %1 {offsets = [3, 0], sizes = [1, 128], strides = [1, 1]} : vector<4x128xf32> to vector<1x128xf32>
    %21 = vector.broadcast %19 : vector<8x1xf32> to vector<8x128xf32>
    %22 = vector.broadcast %20 : vector<1x128xf32> to vector<8x128xf32>
    %23 = arith.mulf %21, %22 : vector<8x128xf32>
    %24 = arith.addf %18, %23 : vector<8x128xf32>
    %25 = math.cos %24 : vector<8x128xf32>
    %26 = math.sin %24 : vector<8x128xf32>
    %c0_3 = arith.constant 0 : index
    %c0_4 = arith.constant 0 : index
    %27 = vector.load %arg3[%c0_3, %c0_4] : memref<1x128xf32, #tpu.memory_space<vmem>>, vector<1x128xf32>
    %cst = arith.constant 5.000000e-01 : f32
    %28 = vector.broadcast %cst : f32 to vector<1x128xf32>
    %29 = arith.cmpf ogt, %27, %28 : vector<1x128xf32>
    %30 = vector.shape_cast %29 : vector<1x128xi1> to vector<1x128xi1>
    %31 = vector.broadcast %30 : vector<1x128xi1> to vector<8x128xi1>
    %32 = arith.select %31, %25, %26 : vector<8x128xi1>, vector<8x128xf32>
    %c0_5 = arith.constant 0 : index
    %c0_6 = arith.constant 0 : index
    %33 = vector.load %arg4[%c0_5, %c0_6] : memref<8x128xf32, #tpu.memory_space<vmem>>, vector<8x128xf32>
    tpu.vector_store %arg4[%c0_5, %c0_6], %32 {strides = array<i32>} : memref<8x128xf32, #tpu.memory_space<vmem>>, vector<8x128xf32>,
    return
  }
  func.func @transform_0(%arg0: i32) -> (i32, i32) {
    %c0_i32 = arith.constant 0 : i32
    %c0_i32_0 = arith.constant 0 : i32
    return %arg0, %c0_i32 : i32, i32
  }
  func.func @transform_1(%arg0: i32) -> (i32, i32) {
    %c0_i32 = arith.constant 0 : i32
    %c0_i32_0 = arith.constant 0 : i32
    %c0_i32_1 = arith.constant 0 : i32
    return %c0_i32, %c0_i32_0 : i32, i32
  }
  func.func @transform_2(%arg0: i32) -> (i32, i32) {
    %c0_i32 = arith.constant 0 : i32
    %c0_i32_0 = arith.constant 0 : i32
    %c0_i32_1 = arith.constant 0 : i32
    return %c0_i32, %c0_i32_0 : i32, i32
  }
  func.func @transform_3(%arg0: i32) -> (i32, i32) {
    %c0_i32 = arith.constant 0 : i32
    %c0_i32_0 = arith.constant 0 : i32
    return %arg0, %c0_i32 : i32, i32
  }
}

</mosaic_0001>

<bundles_post_ra>
// kernel: tpu_custom_call.1
= control target key start
LH: loop header
LB: loop body
LE: loop exit
PB: predicated region body
PF: predicated region fallthrough
CT: control target
= control target key end

     0   :  { %v22_v0 = vlaneseq  ;;  %v344_v3 = vmov 0   ;;  %v345_v4 = vmov 2   ;;  %s422_s0 = inlined_call_operand.vmem [shape: f32[8,4], index: 0, kind: input, shape index: {}]   ;;  %s423_s1 = inlined_call_operand.vmem [shape: f32[4,128], index: 1, kind: input, shape index: {}]   ;;  %s424_s2 = inlined_call_operand.vmem [shape: f32[1,128], index: 2, kind: input, shape index: {}]   ;;  %s425_s3 = inlined_call_operand.hbm [shape: f32[8,128], index: 3, kind: output, shape index: {}]  }
   0x1   :  { %v264_v1 = vld [vmem:[%s424_s2] sm:$0x1]  ;;  %311 = vset.pattern.permute.xlu0 %v344_v3  ;;  %313 = vset.pattern.permute.xlu1 %v345_v4 }
   0x2   :  { %v15_v2 = vld [vmem:[%s422_s0] sm:$0xff]  ;;  %vm265_vm0 = vcmp.gt.f32.partialorder %v264_v1, 0.5 }
   0x3   :  { %8 = vsyncpa [#allocation3], 0  ;;  %v23_v5 = vshrl.u32 %v22_v0, 7  ;;  %19 = vperm.xlu0 %311, %v15_v2   ;;  %38 = vperm.xlu1 %313, %v15_v2   ;;  %v266_v6 = vsel %vm265_vm0, 1, %v344_v3  ;;  %v346_v9 = vmov 1   ;;  %v347_v10 = vmov 3  }
   0x4   :  { %v16_v12 = vld [vmem:[%s423_s1] sm:$0xf]  ;;  %v348_v40 = vmov 683565275   ;;  %v349_v42 = vmov 2475754826  }
   0x5   :  { %v24_v7 = vsub.s32 0, %v23_v5  ;;  %v33_v11 = vsub.s32 1, %v23_v5  ;;  %v43_v14 = vsub.s32 2, %v23_v5  ;;  %v53_v16 = vsub.s32 3, %v23_v5  ;;  %s354_s1 = smov [#allocation2]  }
   0x6   :  { %v350_v45 = vmov 2131351028   ;;  %v351_v48 = vmov 2102212464   ;;  %v352_v51 = vmov 920167782  }
   0x7   :  { %v381_v8 = vrot.slane %v266_v6, %v24_v7  ;;  %312 = vset.pattern.permute.xlu0 %v346_v9  ;;  %314 = vset.pattern.permute.xlu1 %v347_v10  ;;  %v25_v17 = vrot.slane %v16_v12, %v24_v7  ;;  %v34_v18 = vrot.slane %v16_v12, %v33_v11  ;;  %v353_v54 = vmov 1326507024   ;;  %s280_s16 = sshll.u32 %s354_s1, 4  ;;  %s281_s16 = int_to_ptr.vmem [resolvable:$true] %s280_s16 }
   0x8   :  { %28 = vperm.xlu0 %312, %v15_v2   ;;  %48 = vperm.xlu1 %314, %v15_v2   ;;  %v44_v19 = vrot.slane %v16_v12, %v43_v14  ;;  %v54_v20 = vrot.slane %v16_v12, %v53_v16  ;;  %s320_s17 = scalar_lea.vmem %s281_s16, 128  ;;  %p325_p1 = scmp.lt.s32.totalorder %s281_s16, %s281_s16 }
   0x9   :  { %vm271_vm10 = vcmp.eq.s32.totalorder %v381_v8, 1  ;;  %p321_p0 = scmp.ne.s32.totalorder %s281_s16, %s320_s17  ;;  %p326_p2 = scmp.lt.s32.totalorder %s320_s17, %s320_s17 }
   0xb   :  { %p327_p3 = por %p326_p2, %p325_p1 }
   0xc   :  { %315 = vset.pattern.permute.xlu0 %v347_v10 }
   0xd   :  { %p328_p4 = pnand %p327_p3, %p321_p0 }
  0x82   :  { %v20_v13 = vpop.permute.xlu0 %19  ;;  %v39_v15 = vpop.permute.xlu1 %38 }
  0x83   :  { %v26_v23 = vmul.f32 %v25_v17, %v20_v13  ;;  %v45_v25 = vmul.f32 %v44_v19, %v39_v15 }
  0x87   :  { %v29_v21 = vpop.permute.xlu0 %28  ;;  %v49_v22 = vpop.permute.xlu1 %48 }
  0x88   :  { %v35_v24 = vmul.f32 %v34_v18, %v29_v21  ;;  %v55_v27 = vmul.f32 %v54_v20, %v49_v22 }
  0x8a   :  { %v36_v26 = vadd.f32 %v35_v24, %v26_v23 }
  0x8c   :  { %v46_v28 = vadd.f32 %v45_v25, %v36_v26 }
  0x8e   :  { %v386_v29 = vadd.f32 %v55_v27, %v46_v28 }
  0x90   :  { %v60_v30 = vand.u32 2139095040, %v386_v29  ;;  %v57_v34 = vand.u32 2147483647, %v386_v29  ;;  %vm59_vm8 = vcmp.lt.s32.totalorder %v386_v29, 0 }
  0x92   :  { %v61_v31 = vshrl.u32 %v60_v30, 23  ;;  %v64_v37 = vand.u32 8388607, %v57_v34  ;;  %vm58_vm9 = vcmp.le.f32.partialorder %v57_v34, 0.7853982 }
  0x94   :  { %v288_v32 = vadd.s32 4294967169, %v61_v31  ;;  %v65_v56 = vor.u32 8388608, %v64_v37 }
  0x96   :  { %v67_v33 = vadd.s32 1, %v288_v32  ;;  %v105_v6 = vshll.u32 %v65_v56, 8 }
  0x98   :  { %vm68_vm1 = vcmp.gt.s32.totalorder %v67_v33, 0 }
  0x99   :  { %v69_v35 = vsel %vm68_vm1, %v67_v33, 0  ;;  %vm149_vm1 = vweird.f32 %v386_v29 }
  0x9a   :  { %v71_v36 = vand.u32 31, %v69_v35  ;;  %v70_v39 = vshrl.u32 %v69_v35, 5 }
  0x9c   :  { %v72_v38 = vsub.s32 32, %v71_v36  ;;  %v74_v41 = vshll.u32 %v348_v40, %v71_v36  ;;  %v77_v43 = vshll.u32 %v349_v42, %v71_v36  ;;  %v80_v47 = vshll.u32 %v350_v45, %v71_v36 }
  0x9d   :  { %v83_v50 = vshll.u32 %v351_v48, %v71_v36  ;;  %v86_v53 = vshll.u32 %v352_v51, %v71_v36  ;;  %vm89_vm2 = vcmp.lt.s32.totalorder %v70_v39, 1  ;;  %vm92_vm3 = vcmp.lt.s32.totalorder %v70_v39, 4 }
  0x9e   :  { %v75_v44 = vshrl.u32 %v349_v42, %v72_v38  ;;  %v78_v46 = vshrl.u32 %v350_v45, %v72_v38  ;;  %v81_v49 = vshrl.u32 %v351_v48, %v72_v38  ;;  %v84_v52 = vshrl.u32 %v352_v51, %v72_v38 }
  0x9f   :  { %v87_v55 = vshrl.u32 %v353_v54, %v72_v38  ;;  %v73_v1 = vshrl.u32 %v348_v40, %v72_v38  ;;  %vm91_vm4 = vcmp.lt.s32.totalorder %v70_v39, 3  ;;  %vm90_vm5 = vcmp.lt.s32.totalorder %v70_v39, 2 }
  0xa0   :  { %v76_v57 = vor.u32 %v75_v44, %v74_v41  ;;  %v79_v58 = vor.u32 %v78_v46, %v77_v43  ;;  %v82_v59 = vor.u32 %v81_v49, %v80_v47  ;;  %v85_v60 = vor.u32 %v84_v52, %v83_v50 }
  0xa1   :  { %v88_v61 = vor.u32 %v87_v55, %v86_v53 }
  0xa2   :  { %v94_v62 = vsel %vm92_vm3, %v82_v59, 2102212464  ;;  %v97_v63 = vsel %vm89_vm2, %v76_v57, %v79_v58  ;;  %v101_v0 = vsel %vm89_vm2, %v79_v58, %v82_v59  ;;  %v98_v2 = vsel %vm92_vm3, %v85_v60, 920167782 }
  0xa3   :  { %v102_v3 = vsel %vm92_vm3, %v88_v61, 1326507024  ;;  %v99_v4 = vsel %vm91_vm4, %v82_v59, %v98_v2  ;;  %v93_v7 = vsel %vm89_vm2, %v73_v1, %v76_v57  ;;  %v95_v9 = vsel %vm91_vm4, %v79_v58, %v94_v62 }
  0xa4   :  { %v103_v5 = vsel %vm91_vm4, %v85_v60, %v102_v3  ;;  %v100_v10 = vsel %vm90_vm5, %v97_v63, %v99_v4  ;;  %v96_v16 = vsel %vm90_vm5, %v93_v7, %v95_v9 }
  0xa5   :  { %v104_v11 = vsel %vm90_vm5, %v101_v0, %v103_v5  ;;  %v395_v14 = vmul.u32.u64.low %v105_v6, %v100_v10  ;;  %v396_v15 = vmul.u32.u64.high %v105_v6, %v100_v10, %v395_v14  ;;  %v112_v18 = vmul.u32 %v105_v6, %v96_v16 }
  0xa6   :  { %v392_v12 = vmul.u32.u64.low %v105_v6, %v104_v11  ;;  %v393_v13 = vmul.u32.u64.high %v105_v6, %v104_v11, %v392_v12 }
  0xa7   :  { %v115_v17 = vadd.s32 1, %v396_v15 }
  0xa8   :  { %vm114_vm6 = vc.u32 %v393_v13, %v395_v14  ;;  %v113_v31 = vadd.s32 %v395_v14, %v393_v13 }
  0xa9   :  { %v116_v19 = vsel %vm114_vm6, %v115_v17, %v396_v15 }
  0xaa   :  { %v117_v20 = vadd.s32 %v116_v19, %v112_v18 }
  0xac   :  { %v118_v21 = vadd.s32 536870912, %v117_v20 }
  0xae   :  { %v119_v22 = vshrl.u32 %v118_v21, 30 }
  0xb0   :  { %v120_v23 = vshll.u32 %v119_v22, 30  ;;  %v143_v44 = vsub.s32 4, %v119_v22 }
  0xb2   :  { %v121_v24 = vsub.s32 %v117_v20, %v120_v23  ;;  %v144_v47 = vsel %vm59_vm8, %v143_v44, %v119_v22 }
  0xb3   :  { %v146_v49 = vsel %vm58_vm9, 0, %v144_v47 }
  0xb4   :  { %v123_v25 = vsub.s32 0, %v121_v24  ;;  %v253_v50 = vadd.s32 3, %v146_v49  ;;  %v150_v51 = vand.u32 3, %v146_v49 }
  0xb6   :  { %v289_v26 = vmin.u32 %v123_v25, %v121_v24  ;;  %v254_v52 = vand.u32 3, %v253_v50  ;;  %vm155_vm11 = vcmp.eq.s32.totalorder %v150_v51, 2  ;;  %vm152_vm13 = vcmp.eq.s32.totalorder %v150_v51, 0 }
  0xb7   :  { %vm151_vm15 = vcmp.lt.s32.totalorder %v150_v51, 2 }
  0xb8   :  { %v125_v27 = vclz %v289_v26  ;;  %vm259_vm12 = vcmp.eq.s32.totalorder %v254_v52, 2  ;;  %vm256_vm14 = vcmp.eq.s32.totalorder %v254_v52, 0  ;;  %vm255_vm0 = vcmp.lt.s32.totalorder %v254_v52, 2 }
  0xba   :  { %v290_v28 = vadd.s32 4294967294, %v125_v27 }
  0xbc   :  { %vm291_vm7 = vcmp.lt.s32.totalorder %v290_v28, 0 }
  0xbd   :  { %v128_v30 = vsel %vm291_vm7, 0, %v290_v28 }
  0xbe   :  { %v129_v32 = vsub.s32 32, %v128_v30  ;;  %v133_v33 = vsub.s32 4294967266, %v128_v30  ;;  %v130_v35 = vshll.u32 %v121_v24, %v128_v30 }
  0xc0   :  { %v131_v36 = vshrl.u32 %v113_v31, %v129_v32  ;;  %v134_v37 = vadd.s32 127, %v133_v33 }
  0xc2   :  { %v132_v38 = vor.u32 %v131_v36, %v130_v35  ;;  %v135_v39 = vshll.u32 %v134_v37, 23 }
  0xc4   :  { %v136_v40 = vor.u32 4788187, %v135_v39  ;;  %v139_v42 = vcvt.s32.f32 %v132_v38 }
  0xc6   :  { %v137_v41 = vand.u32 2147483647, %v136_v40 }
  0xc8   :  { %v140_v43 = vmul.f32 %v139_v42, %v137_v41 }
  0xca   :  { %v141_v45 = vxor.u32 2147483648, %v140_v43 }
  0xcc   :  { %v142_v46 = vsel %vm59_vm8, %v141_v45, %v140_v43 }
  0xcd   :  { %v145_v48 = vsel %vm58_vm9, %v386_v29, %v142_v46 }
  0xce   :  { %316 = vcosq.f32 %v145_v48 }
  0xcf   :  { %318 = vsinq.f32 %v145_v48 }
  0xd8   :  { %v317_v53 = vpop.eup %316 }
  0xd9   :  { %v319_v54 = vpop.eup %318  ;;  %v156_v55 = vxor.u32 2147483648, %v317_v53 }
  0xda   :  { %v153_v56 = vxor.u32 2147483648, %v319_v54 }
  0xdb   :  { %v157_v57 = vsel %vm155_vm11, %v156_v55, %v319_v54  ;;  %v261_v34 = vsel %vm259_vm12, %v156_v55, %v319_v54 }
  0xdc   :  { %v154_v58 = vsel %vm152_vm13, %v317_v53, %v153_v56  ;;  %v258_v59 = vsel %vm256_vm14, %v317_v53, %v153_v56 }
  0xdd   :  { %v158_v60 = vsel %vm151_vm15, %v154_v58, %v157_v57  ;;  %v262_v61 = vsel %vm255_vm0, %v258_v59, %v261_v34 }
  0xde   :  { %v159_v62 = vsel %vm149_vm1, nan, %v158_v60  ;;  %v263_v63 = vsel %vm149_vm1, nan, %v262_v61 }
  0xdf   :  { %v272_v0 = vsel %vm271_vm10, %v159_v62, %v263_v63 }
  0xe0   :  { %273 = vst [vmem:[#allocation2] sm:$0xff] %v272_v0 }
  0xe1   :  { %331 = shalt.err (!%p328_p4)
}
  0xe2   :  { %s332_s20 = scalar_lea.hbm %s425_s3, 128 }
  0xe3   :  { %p333_p5 = scmp.ne.s32.totalorder %s425_s3, %s332_s20  ;;  %p336_p6 = scmp.lt.u32.totalorder %s332_s20, %s425_s3 }
  0xe5   :  { %p338_p7 = pnand %p336_p6, %p333_p5 }
  0xe7   :  { %341 = shalt.err (!%p338_p7)
}
  0xe8   :  { %283 = dma.vmem_to_hbm [thread:$0]  %s281_s16, 128, %s425_s3, [#allocation3]  }
  0xe9   :  { %342 = dma.done.wait [#allocation3], 128  }
  0xea   :  { %343 = vsyncadd [#allocation3], 4294967168 }
  0xeb   :  { %287 = vsyncpa [#allocation3], 1 }

</bundles_post_ra>
